<compile_context>
chip_gen: v6e
topology: v6e:2x2x1
jax: 0.10.0
libtpu: 0.0.40
codegen_flags: <defaults>
</compile_context>

<pallas_src>
import jax
import jax.numpy as jnp
from jax.experimental import pallas as pl
from jax.experimental.pallas import tpu as pltpu


def _mlp_kernel(x_ref, w1_ref, b1_ref, w2_ref, b2_ref, o_ref):
    """One batch tile.

    x_ref  : (TB, F)    input rows (pipelined over the batch grid)
    w1_ref : (F, H)     first-layer weight (pre-transposed), VMEM-resident
    b1_ref : (1, H)     first-layer bias (f32), VMEM-resident
    w2_ref : (1, H)     second-layer weight row (f32), VMEM-resident
    b2_ref : (1,)       second-layer bias, SMEM scalar
    o_ref  : (1, 1, TB) lane-dense output row (batch on the lane axis)
    """
    # Layer 1 on the MXU with f32 accumulate; bias add + ReLU in f32 on the VPU.
    h = jnp.dot(x_ref[...], w1_ref[...],
                preferred_element_type=jnp.float32) + b1_ref[...]
    h = jnp.maximum(h, 0.0)                                    # (TB, H) f32

    # Layer 2: contract over H with the weight *row* (trans-B style matmul) so
    # the result is a lane-dense (1, TB) tile -- batch on lanes -- instead of a
    # lane-sparse (TB, 1) column that would force masked partial stores.
    out_row = jax.lax.dot_general(
        w2_ref[...].astype(jnp.float32), h,
        dimension_numbers=(((1,), (1,)), ((), ())),
        preferred_element_type=jnp.float32)                    # (1, TB)

    out_row = out_row + b2_ref[0]                              # SMEM scalar bias
    o_ref[...] = out_row.reshape(o_ref.shape).astype(o_ref.dtype)


def linear_regression_feed_forward(x, w1, b1, w2, b2, *, block_rows=512):
    """x: (B, F); w1: (H, F); b1: (H,); w2: (1, H); b2: (1,) -> (B, 1)."""
    B, F = x.shape
    H = w1.shape[0]
    assert block_rows % 128 == 0, "block_rows must be a multiple of 128 (lane-aligned)"

    tb = block_rows
    num_tiles = pl.cdiv(B, tb)
    b_pad = num_tiles * tb

    # Pad the batch to a whole number of tiles; padded rows are sliced off below.
    x_p = jnp.pad(x, ((0, b_pad - B), (0, 0))) if b_pad != B else x

    # Glue: pre-transpose / reshape params once.  Biases and w2 stay f32 so the
    # epilogue is f32 even if the x / w1 stream is bf16.
    w1_t = w1.T.astype(x.dtype)                     # (F, H)
    b1_row = b1.reshape(1, H).astype(jnp.float32)   # (1, H)
    w2_row = w2.reshape(1, H).astype(jnp.float32)   # (1, H)
    b2_s = b2.reshape(1).astype(jnp.float32)        # (1,)  -> SMEM scalar

    grid_spec = pltpu.PrefetchScalarGridSpec(
        num_scalar_prefetch=0,
        grid=(num_tiles,),
        in_specs=[
            pl.BlockSpec((tb, F), lambda i: (i, 0)),             # x: pipelined
            pl.BlockSpec((F, H), lambda i: (0, 0)),              # w1: resident
            pl.BlockSpec((1, H), lambda i: (0, 0)),              # b1: resident
            pl.BlockSpec((1, H), lambda i: (0, 0)),              # w2: resident
            pl.BlockSpec(memory_space=pltpu.MemorySpace.SMEM),   # b2: scalar
        ],
        out_specs=pl.BlockSpec((1, 1, tb), lambda i: (i, 0, 0)),
    )

    itemsize = x.dtype.itemsize
    cost = pl.CostEstimate(
        flops=2 * b_pad * F * H + 3 * b_pad * H,
        transcendentals=0,
        bytes_accessed=b_pad * F * itemsize + b_pad * itemsize
                       + (F * H + 2 * H + 1) * 4,
    )

    out_rows = pl.pallas_call(
        _mlp_kernel,
        out_shape=jax.ShapeDtypeStruct((num_tiles, 1, tb), x.dtype),
        grid_spec=grid_spec,
        compiler_params=pltpu.CompilerParams(
            dimension_semantics=("parallel",),
            vmem_limit_bytes=32 * 1024 * 1024,
        ),
        cost_estimate=cost,
    )(x_p, w1_t, b1_row, w2_row, b2_s)

    # (num_tiles, 1, TB) -> (B_pad, 1) -> (B, 1); row-major order == batch order.
    return out_rows.reshape(b_pad, 1)[:B]


def _init_linear_params(key, in_features, out_features):
    # Deterministic init mimicking torch.nn.Linear default:
    # U(-1/sqrt(fan_in), 1/sqrt(fan_in))
    kw, kb = jax.random.split(key)
    bound = 1.0 / (in_features ** 0.5)
    w = jax.random.uniform(kw, (out_features, in_features),
                           minval=-bound, maxval=bound, dtype=jnp.float32)
    b = jax.random.uniform(kb, (out_features,),
                           minval=-bound, maxval=bound, dtype=jnp.float32)
    return w, b


if __name__ == "__main__":
    input_features = 4
    hidden_layers1 = 2

    key = jax.random.PRNGKey(0)
    kx, k1, k2, kx2 = jax.random.split(key, 4)

    w1, b1 = _init_linear_params(k1, input_features, hidden_layers1)
    w2, b2 = _init_linear_params(k2, hidden_layers1, 1)

    def ref_fwd(x):
        # Same math as the PyTorch forward, in plain JAX.
        return jnp.maximum(x @ w1.T + b1, 0.0) @ w2.T + b2

    # Small case (matches the toy module sizes): single grid step.
    x_small = jax.random.normal(kx, (8, input_features), dtype=jnp.float32)
    out_small = jax.block_until_ready(
        linear_regression_feed_forward(x_small, w1, b1, w2, b2, block_rows=128))
    assert out_small.shape == (8, 1)
    assert jnp.allclose(out_small, ref_fwd(x_small), atol=1e-5, rtol=1e-5)

    # Larger, non-multiple batch: exercises the multi-tile pipelined grid + padding.
    x_big = jax.random.normal(kx2, (1000, input_features), dtype=jnp.float32)
    out_big = jax.block_until_ready(
        linear_regression_feed_forward(x_big, w1, b1, w2, b2, block_rows=256))
    assert out_big.shape == (1000, 1)
    assert jnp.allclose(out_big, ref_fwd(x_big), atol=1e-5, rtol=1e-5)

    print("KERNEL_OK")
</pallas_src>

<mosaic_0001>
module attributes {stable_mosaic.version = 11 : i64} {
  func.func @_mlp_kernel(%arg0: i32, %arg1: memref<128x4xf32, #tpu.memory_space<vmem>>, %arg2: memref<4x2xf32, #tpu.memory_space<vmem>>, %arg3: memref<1x2xf32, #tpu.memory_space<vmem>>, %arg4: memref<1x2xf32, #tpu.memory_space<vmem>>, %arg5: memref<1xf32, #tpu.memory_space<smem>>, %arg6: memref<1x1x128xf32, #tpu.memory_space<vmem>>) attributes {dimension_semantics = [#tpu.dimension_semantics<parallel>], iteration_bounds = array<i64: 1>, scalar_prefetch = 0 : i64, scratch_operands = 0 : i64, tpu.core_type = #tpu.core_type<tc>, window_params = [{transform_indices = @transform_0, window_bounds = array<i64: 128, 4>}, {pipeline_mode = #tpu.pipeline_mode<synchronous>, transform_indices = @transform_1, window_bounds = array<i64: 4, 2>}, {pipeline_mode = #tpu.pipeline_mode<synchronous>, transform_indices = @transform_2, window_bounds = array<i64: 1, 2>}, {pipeline_mode = #tpu.pipeline_mode<synchronous>, transform_indices = @transform_3, window_bounds = array<i64: 1, 2>}, {transform_indices = @transform_4, window_bounds = array<i64: 1>}, {transform_indices = @transform_5, window_bounds = array<i64: 1, 1, 128>}]} {
    %c0 = arith.constant 0 : index
    %c0_0 = arith.constant 0 : index
    %0 = vector.load %arg1[%c0, %c0_0] : memref<128x4xf32, #tpu.memory_space<vmem>>, vector<128x4xf32>
    %c0_1 = arith.constant 0 : index
    %c0_2 = arith.constant 0 : index
    %1 = vector.load %arg2[%c0_1, %c0_2] : memref<4x2xf32, #tpu.memory_space<vmem>>, vector<4x2xf32>
    %cst = arith.constant dense<0.000000e+00> : vector<128x2xf32>
    %2 = tpu.matmul %0, %1, %cst {dimension_numbers = #tpu.dot_dimension_numbers<[1], [0], [0], [1], [0, 0, 1, 1], [], []>} : vector<128x4xf32>, vector<4x2xf32>, vector<128x2xf32> -> vector<128x2xf32>
    %c0_3 = arith.constant 0 : index
    %c0_4 = arith.constant 0 : index
    %3 = vector.load %arg3[%c0_3, %c0_4] : memref<1x2xf32, #tpu.memory_space<vmem>>, vector<1x2xf32>
    %4 = vector.broadcast %3 : vector<1x2xf32> to vector<128x2xf32>
    %5 = arith.addf %2, %4 : vector<128x2xf32>
    %cst_5 = arith.constant 0.000000e+00 : f32
    %6 = vector.broadcast %cst_5 : f32 to vector<128x2xf32>
    %7 = arith.maximumf %5, %6 : vector<128x2xf32>
    %c0_6 = arith.constant 0 : index
    %c0_7 = arith.constant 0 : index
    %8 = vector.load %arg4[%c0_6, %c0_7] : memref<1x2xf32, #tpu.memory_space<vmem>>, vector<1x2xf32>
    %cst_8 = arith.constant dense<0.000000e+00> : vector<1x128xf32>
    %9 = tpu.matmul %8, %7, %cst_8 {dimension_numbers = #tpu.dot_dimension_numbers<[1], [1], [0], [0], [0, 0, 1, 0], [], []>} : vector<1x2xf32>, vector<128x2xf32>, vector<1x128xf32> -> vector<1x128xf32>
    %c0_9 = arith.constant 0 : index
    %10 = memref.load %arg5[%c0_9] : memref<1xf32, #tpu.memory_space<smem>>
    %11 = vector.broadcast %10 : f32 to vector<1x128xf32>
    %12 = arith.addf %9, %11 : vector<1x128xf32>
    %13 = vector.shape_cast %12 : vector<1x128xf32> to vector<1x1x128xf32>
    %c0_10 = arith.constant 0 : index
    %c0_11 = arith.constant 0 : index
    %c0_12 = arith.constant 0 : index
    %14 = vector.load %arg6[%c0_10, %c0_11, %c0_12] : memref<1x1x128xf32, #tpu.memory_space<vmem>>, vector<1x1x128xf32>
    tpu.vector_store %arg6[%c0_10, %c0_11, %c0_12], %13 {strides = array<i32>} : memref<1x1x128xf32, #tpu.memory_space<vmem>>, vector<1x1x128xf32>,
    return
  }
  func.func @transform_0(%arg0: i32) -> (i32, i32) {
    %c0_i32 = arith.constant 0 : i32
    %c0_i32_0 = arith.constant 0 : i32
    return %arg0, %c0_i32 : i32, i32
  }
  func.func @transform_1(%arg0: i32) -> (i32, i32) {
    %c0_i32 = arith.constant 0 : i32
    %c0_i32_0 = arith.constant 0 : i32
    %c0_i32_1 = arith.constant 0 : i32
    return %c0_i32, %c0_i32_0 : i32, i32
  }
  func.func @transform_2(%arg0: i32) -> (i32, i32) {
    %c0_i32 = arith.constant 0 : i32
    %c0_i32_0 = arith.constant 0 : i32
    %c0_i32_1 = arith.constant 0 : i32
    return %c0_i32, %c0_i32_0 : i32, i32
  }
  func.func @transform_3(%arg0: i32) -> (i32, i32) {
    %c0_i32 = arith.constant 0 : i32
    %c0_i32_0 = arith.constant 0 : i32
    %c0_i32_1 = arith.constant 0 : i32
    return %c0_i32, %c0_i32_0 : i32, i32
  }
  func.func @transform_4(%arg0: i32) -> i32 {
    %c0_i32 = arith.constant 0 : i32
    %c0_i32_0 = arith.constant 0 : i32
    return %c0_i32 : i32
  }
  func.func @transform_5(%arg0: i32) -> (i32, i32, i32) {
    %c0_i32 = arith.constant 0 : i32
    %c0_i32_0 = arith.constant 0 : i32
    %c0_i32_1 = arith.constant 0 : i32
    return %arg0, %c0_i32, %c0_i32_0 : i32, i32, i32
  }
}

</mosaic_0001>

<bundles_post_ra>
// kernel: tpu_custom_call.1
= control target key start
LH: loop header
LB: loop body
LE: loop exit
PB: predicated region body
PF: predicated region fallthrough
CT: control target
= control target key end

     0   :  { %vm95_vm0 = vcmask 1043456   ;;  %vm46_vm1 = vcmask 31744   ;;  %s710_s0 = inlined_call_operand.vmem [shape: f32[128,4], index: 0, kind: input, shape index: {}]   ;;  %s711_s1 = inlined_call_operand.vmem [shape: f32[4,2], index: 1, kind: input, shape index: {}]   ;;  %s712_s2 = inlined_call_operand.vmem [shape: f32[1,2], index: 2, kind: input, shape index: {}]   ;;  %s713_s3 = inlined_call_operand.vmem [shape: f32[1,2], index: 3, kind: input, shape index: {}]   ;;  %s714_s4 = inlined_call_operand.<no memory space> [shape: f32[1], index: 4, kind: input, shape index: {}]   ;;  %s715_s5 = inlined_call_operand.hbm [shape: f32[1,1,128], index: 5, kind: output, shape index: {}]  }
   0x1   :  { %v38_v0 = vld [vmem:[%s711_s1] sm:$0xf]  ;;  %v23_v2 = vld [vmem:[%s710_s0 + $0x8] sm:$0xff]  ;;  %v24_v3 = vld [vmem:[%s710_s0 + $0x10] sm:$0xff] }
   0x2   :  { %v22_v1 = vld [vmem:[%s710_s0] sm:$0xff]  ;;  %469 = vmatprep.subr.msk.mxu0 %vm95_vm0, %v38_v0  ;;  %v25_v4 = vld [vmem:[%s710_s0 + $0x18] sm:$0xff] }
   0x3   :  { %471 = vmatprep.mubr.msk.f32.mxu0 %vm46_vm1, %v22_v1  ;;  %470 = vmatpush3.msk.msra.mxu0 %vm95_vm0, %v38_v0  ;;  %v26_v5 = vld [vmem:[%s710_s0 + $0x20] sm:$0xff] }
   0x4   :  { %472 = vmatmul.mubr.msk.f32.vlgmr.msra.gmra.mxu0 %vm46_vm1, %v23_v2 }
   0x5   :  { %474 = vmatprep.mubr.msk.f32.mxu0 %vm46_vm1, %v24_v3 }
   0x6   :  { %11 = vsyncpa [#allocation4], 0  ;;  %v27_v6 = vld [vmem:[%s710_s0 + $0x28] sm:$0xff]  ;;  %v28_v7 = vld [vmem:[%s710_s0 + $0x30] sm:$0xff]  ;;  %v555_v17 = vmov 0.0   ;;  %vm556_vm2 = vmmov 0  }
   0x7   :  { %v29_v8 = vld [vmem:[%s710_s0 + $0x38] sm:$0xff]  ;;  %v30_v9 = vld [vmem:[%s710_s0 + $0x40] sm:$0xff]  ;;  %v31_v10 = vld [vmem:[%s710_s0 + $0x48] sm:$0xff]  ;;  %495 = vmatprep.subr.mxu1 %v555_v17  ;;  %527 = vmatprep.mubr.msk.f32.mxu1 %vm556_vm2, %v555_v17  ;;  %vm263_vm3 = vcmask 15360   ;;  %s557_s29 = smov [#allocation3]  }
   0x8   :  { %475 = vmatmul.mubr.msk.f32.gmra.mxu0 %vm46_vm1, %v25_v4  ;;  %v32_v11 = vld [vmem:[%s710_s0 + $0x50] sm:$0xff]  ;;  %v33_v12 = vld [vmem:[%s710_s0 + $0x58] sm:$0xff]  ;;  %v34_v13 = vld [vmem:[%s710_s0 + $0x60] sm:$0xff]  ;;  %v262_v4 = vstv %s714_s4  ;;  %s392_s30 = sshll.u32 %s557_s29, 4  ;;  %s393_s30 = int_to_ptr.vmem [resolvable:$true] %s392_s30 }
   0x9   :  { %477 = vmatprep.mubr.msk.f32.mxu0 %vm46_vm1, %v26_v5  ;;  %v35_v14 = vld [vmem:[%s710_s0 + $0x68] sm:$0xff]  ;;  %v36_v15 = vld [vmem:[%s710_s0 + $0x70] sm:$0xff]  ;;  %v37_v16 = vld [vmem:[%s710_s0 + $0x78] sm:$0xff]  ;;  %s533_s6 = scalar_lea.vmem %s393_s30, 16  ;;  %s537_s7 = scalar_lea.vmem %s393_s30, 32 }
   0xa   :  { %v400_v32 = vld [vmem:[%s712_s2] ss:$0 sm:$0xff]  ;;  %p534_p0 = scmp.ne.s32.totalorder %s393_s30, %s533_s6  ;;  %p538_p1 = scmp.lt.s32.totalorder %s393_s30, %s393_s30 }
   0xb   :  { %v260_v3 = vld [vmem:[%s713_s3] sm:$0x1]  ;;  %p539_p2 = scmp.lt.s32.totalorder %s537_s7, %s533_s6 }
   0xc   :  { %478 = vmatmul.mubr.msk.f32.gmra.mxu0 %vm46_vm1, %v27_v6 }
   0xd   :  { %480 = vmatprep.mubr.msk.f32.mxu0 %vm46_vm1, %v28_v7  ;;  %p540_p3 = por %p539_p2, %p538_p1 }
   0xf   :  { %p541_p4 = pnand %p540_p3, %p534_p0 }
  0x10   :  { %481 = vmatmul.mubr.msk.f32.gmra.mxu0 %vm46_vm1, %v29_v8 }
  0x11   :  { %483 = vmatprep.mubr.msk.f32.mxu0 %vm46_vm1, %v30_v9 }
  0x14   :  { %484 = vmatmul.mubr.msk.f32.gmra.mxu0 %vm46_vm1, %v31_v10 }
  0x15   :  { %486 = vmatprep.mubr.msk.f32.mxu0 %vm46_vm1, %v32_v11 }
  0x18   :  { %487 = vmatmul.mubr.msk.f32.gmra.mxu0 %vm46_vm1, %v33_v12 }
  0x19   :  { %489 = vmatprep.mubr.msk.f32.mxu0 %vm46_vm1, %v34_v13 }
  0x1c   :  { %490 = vmatmul.mubr.msk.f32.gmra.mxu0 %vm46_vm1, %v35_v14 }
  0x1d   :  { %492 = vmatprep.mubr.msk.f32.mxu0 %vm46_vm1, %v36_v15 }
  0x20   :  { %493 = vmatmul.mubr.msk.f32.gmra.mxu0 %vm46_vm1, %v37_v16 }
  0xc4   :  { %v657_v18 = vpop.f32.mrf.mxu0 }
  0xc5   :  { %v171_v62 = vadd.f32 %v657_v18, %v400_v32 }
  0xc6   :  { %v659_v19 = vpop.f32.mrf.mxu0 }
  0xc7   :  { %v245_v0 = vmax.f32 %v171_v62, 0.0  ;;  %v166_v1 = vadd.f32 %v400_v32, %v659_v19 }
  0xc8   :  { %v476_v20 = vpop.f32.mrf.mxu0 }
  0xc9   :  { %v181_v58 = vadd.f32 %v476_v20, %v400_v32  ;;  %v244_v2 = vmax.f32 %v166_v1, 0.0 }
  0xca   :  { %v661_v21 = vpop.f32.mrf.mxu0 }
  0xcb   :  { %v247_v60 = vmax.f32 %v181_v58, 0.0  ;;  %v176_v61 = vadd.f32 %v400_v32, %v661_v21 }
  0xcc   :  { %v479_v22 = vpop.f32.mrf.mxu0 }
  0xcd   :  { %v191_v54 = vadd.f32 %v479_v22, %v400_v32  ;;  %v246_v63 = vmax.f32 %v176_v61, 0.0 }
  0xce   :  { %v185_v23 = vpop.f32.mrf.mxu0 }
  0xcf   :  { %v249_v56 = vmax.f32 %v191_v54, 0.0  ;;  %v186_v57 = vadd.f32 %v400_v32, %v185_v23 }
  0xd0   :  { %v482_v24 = vpop.f32.mrf.mxu0 }
  0xd1   :  { %v201_v50 = vadd.f32 %v482_v24, %v400_v32  ;;  %v248_v59 = vmax.f32 %v186_v57, 0.0 }
  0xd2   :  { %v195_v25 = vpop.f32.mrf.mxu0 }
  0xd3   :  { %v251_v52 = vmax.f32 %v201_v50, 0.0  ;;  %v196_v53 = vadd.f32 %v400_v32, %v195_v25 }
  0xd4   :  { %v485_v26 = vpop.f32.mrf.mxu0 }
  0xd5   :  { %v211_v46 = vadd.f32 %v485_v26, %v400_v32  ;;  %v250_v55 = vmax.f32 %v196_v53, 0.0 }
  0xd6   :  { %v205_v27 = vpop.f32.mrf.mxu0 }
  0xd7   :  { %v253_v48 = vmax.f32 %v211_v46, 0.0  ;;  %v206_v49 = vadd.f32 %v400_v32, %v205_v27 }
  0xd8   :  { %v488_v28 = vpop.f32.mrf.mxu0 }
  0xd9   :  { %v221_v42 = vadd.f32 %v488_v28, %v400_v32  ;;  %v252_v51 = vmax.f32 %v206_v49, 0.0 }
  0xda   :  { %v215_v29 = vpop.f32.mrf.mxu0 }
  0xdb   :  { %v255_v44 = vmax.f32 %v221_v42, 0.0  ;;  %v216_v45 = vadd.f32 %v400_v32, %v215_v29 }
  0xdc   :  { %v491_v30 = vpop.f32.mrf.mxu0 }
  0xdd   :  { %v231_v38 = vadd.f32 %v491_v30, %v400_v32  ;;  %v254_v47 = vmax.f32 %v216_v45, 0.0 }
  0xde   :  { %v225_v31 = vpop.f32.mrf.mxu0 }
  0xdf   :  { %v257_v40 = vmax.f32 %v231_v38, 0.0  ;;  %v226_v41 = vadd.f32 %v400_v32, %v225_v31 }
  0xe0   :  { %v494_v33 = vpop.f32.mrf.mxu0 }
  0xe1   :  { %v241_v34 = vadd.f32 %v494_v33, %v400_v32  ;;  %v256_v43 = vmax.f32 %v226_v41, 0.0 }
  0xe2   :  { %v235_v35 = vpop.f32.mrf.mxu0 }
  0xe3   :  { %v259_v36 = vmax.f32 %v241_v34, 0.0  ;;  %v236_v37 = vadd.f32 %v400_v32, %v235_v35 }
  0xe5   :  { %496 = vmatpush3.xpose.msk.msra.mxu1 %vm263_vm3, %v259_v36  ;;  %v258_v39 = vmax.f32 %v236_v37, 0.0 }
  0xe6   :  { %497 = vmatprep.subr.mxu1 %v555_v17 }
  0xe9   :  { %498 = vmatpush3.xpose.msk.msra.mxu1 %vm263_vm3, %v258_v39 }
  0xea   :  { %499 = vmatprep.subr.mxu1 %v555_v17 }
  0xed   :  { %500 = vmatpush3.xpose.msk.msra.mxu1 %vm263_vm3, %v257_v40 }
  0xee   :  { %501 = vmatprep.subr.mxu1 %v555_v17 }
  0xf1   :  { %502 = vmatpush3.xpose.msk.msra.mxu1 %vm263_vm3, %v256_v43 }
  0xf2   :  { %503 = vmatprep.subr.mxu1 %v555_v17 }
  0xf5   :  { %504 = vmatpush3.xpose.msk.msra.mxu1 %vm263_vm3, %v255_v44 }
  0xf6   :  { %505 = vmatprep.subr.mxu1 %v555_v17 }
  0xf9   :  { %506 = vmatpush3.xpose.msk.msra.mxu1 %vm263_vm3, %v254_v47 }
  0xfa   :  { %507 = vmatprep.subr.mxu1 %v555_v17 }
  0xfd   :  { %508 = vmatpush3.xpose.msk.msra.mxu1 %vm263_vm3, %v253_v48 }
  0xfe   :  { %509 = vmatprep.subr.mxu1 %v555_v17 }
 0x101   :  { %510 = vmatpush3.xpose.msk.msra.mxu1 %vm263_vm3, %v252_v51 }
 0x102   :  { %511 = vmatprep.subr.mxu1 %v555_v17 }
 0x105   :  { %512 = vmatpush3.xpose.msk.msra.mxu1 %vm263_vm3, %v251_v52 }
 0x106   :  { %513 = vmatprep.subr.mxu1 %v555_v17 }
 0x109   :  { %514 = vmatpush3.xpose.msk.msra.mxu1 %vm263_vm3, %v250_v55 }
 0x10a   :  { %515 = vmatprep.subr.mxu1 %v555_v17 }
 0x10d   :  { %516 = vmatpush3.xpose.msk.msra.mxu1 %vm263_vm3, %v249_v56 }
 0x10e   :  { %517 = vmatprep.subr.mxu1 %v555_v17 }
 0x111   :  { %518 = vmatpush3.xpose.msk.msra.mxu1 %vm263_vm3, %v248_v59 }
 0x112   :  { %519 = vmatprep.subr.mxu1 %v555_v17 }
 0x115   :  { %520 = vmatpush3.xpose.msk.msra.mxu1 %vm263_vm3, %v247_v60 }
 0x116   :  { %521 = vmatprep.subr.mxu1 %v555_v17 }
 0x119   :  { %522 = vmatpush3.xpose.msk.msra.mxu1 %vm263_vm3, %v246_v63 }
 0x11a   :  { %523 = vmatprep.subr.mxu1 %v555_v17 }
 0x11d   :  { %524 = vmatpush3.xpose.msk.msra.mxu1 %vm263_vm3, %v245_v0 }
 0x11e   :  { %525 = vmatprep.subr.mxu1 %v555_v17 }
 0x121   :  { %526 = vmatpush3.xpose.msk.msra.mxu1 %vm263_vm3, %v244_v2 }
 0x124   :  { %528 = vmatmul.mubr.msk.f32.vlgmr.msra.gmra.mxu1 %vm263_vm3, %v260_v3 }
 0x1e4   :  { %v381_v5 = vpop.f32.mrf.mxu1 }
 0x1e5   :  { %v382_v6 = vadd.f32 %v381_v5, %v262_v4 }
 0x1e6   :  { %v529_v7 = vpop.f32.mrf.mxu1 }
 0x1e7   :  { %385 = vst [vmem:[#allocation3] sm:$0x1] %v382_v6 }
 0x1e8   :  { %544 = shalt.err (!%p541_p4)
}
 0x1e9   :  { %395 = dma.vmem_to_hbm [thread:$0]  %s393_s30, 16, %s715_s5, [#allocation4]  }
 0x1ea   :  { %553 = dma.done.wait [#allocation4], 16  }
 0x1eb   :  { %554 = vsyncadd [#allocation4], 4294967280 }
 0x1ec   :  { %399 = vsyncpa [#allocation4], 1 }

</bundles_post_ra>
